<compile_context>
chip_gen: v5e
topology: v5e:2x2
jax: 0.10.0
libtpu: 0.0.40
codegen_flags: <defaults>
</compile_context>

<pallas_src>
import jax
import jax.numpy as jnp
from jax.experimental import pallas as pl
from jax.experimental.pallas import tpu as pltpu


def _circular_pad_kernel(x_ref, o_ref):
    # x_ref block: (CT, H, W); o_ref block: (CT, H+2, W+2)
    H, W = x_ref.shape[1], x_ref.shape[2]
    x = x_ref[...]                                  # (CT, H, W)
    last_row = x[:, H - 1:H, :]                     # (CT, 1, W)
    first_row = x[:, 0:1, :]                        # (CT, 1, W)
    last_col = x[:, :, W - 1:W]                     # (CT, H, 1)
    first_col = x[:, :, 0:1]                        # (CT, H, 1)

    # Interior + wrapped top/bottom halo rows (output columns 1..W).
    o_ref[:, 1:H + 1, 1:W + 1] = x
    o_ref[:, 0:1, 1:W + 1] = last_row
    o_ref[:, H + 1:H + 2, 1:W + 1] = first_row
    # Left halo column (wraps from last input column), corners included.
    o_ref[:, 1:H + 1, 0:1] = last_col
    o_ref[:, 0:1, 0:1] = last_col[:, H - 1:H, :]
    o_ref[:, H + 1:H + 2, 0:1] = last_col[:, 0:1, :]
    # Right halo column (wraps from first input column), corners included.
    o_ref[:, 1:H + 1, W + 1:W + 2] = first_col
    o_ref[:, 0:1, W + 1:W + 2] = first_col[:, H - 1:H, :]
    o_ref[:, H + 1:H + 2, W + 1:W + 2] = first_col[:, 0:1, :]


def circular_pad(x, *, block_bytes=4 * 1024 * 1024):
    """Circular pad of 1 on H and W of an NCHW tensor via a Pallas TPU kernel."""
    N, C, H, W = x.shape
    NC = N * C
    xf = x.reshape(NC, H, W)                        # flatten batch/channel axes

    itemsize = jnp.dtype(x.dtype).itemsize
    per_image = (H * W + (H + 2) * (W + 2)) * itemsize      # in + out bytes
    # Block sizing: combined in+out block <= block_bytes, so double-buffered
    # traffic stays well inside 32 MiB scoped VMEM (fits v7x/v6e/v5e alike).
    ct_cap = max(1, block_bytes // per_image)
    # Keep at least 2 grid steps when possible so v7x's 2 TensorCores both work.
    min_blocks = 2 if NC >= 2 else 1
    ct = max(1, min(ct_cap, pl.cdiv(NC, min_blocks), NC))
    grid = (pl.cdiv(NC, ct),)

    out = pl.pallas_call(
        _circular_pad_kernel,
        out_shape=jax.ShapeDtypeStruct((NC, H + 2, W + 2), x.dtype),
        grid=grid,
        in_specs=[pl.BlockSpec((ct, H, W), lambda g: (g, 0, 0))],
        out_specs=pl.BlockSpec((ct, H + 2, W + 2), lambda g: (g, 0, 0)),
        compiler_params=pltpu.CompilerParams(
            dimension_semantics=("parallel",),
            vmem_limit_bytes=32 * 1024 * 1024,
        ),
        cost_estimate=pl.CostEstimate(
            flops=0,
            transcendentals=0,
            bytes_accessed=NC * per_image,
        ),
    )(xf)
    return out.reshape(N, C, H + 2, W + 2)


if __name__ == "__main__":
    key = jax.random.PRNGKey(0)
    x = jax.random.normal(key, (2, 4, 16, 16), dtype=jnp.float32)

    out = circular_pad(x)
    out = jax.block_until_ready(out)

    # Reference: jnp.pad wrap mode == PyTorch F.pad(..., mode='circular') for pad=1.
    ref = jnp.pad(x, ((0, 0), (0, 0), (1, 1), (1, 1)), mode="wrap")
    assert out.shape == (2, 4, 18, 18)
    assert jnp.allclose(out, ref)

    print("KERNEL_OK")
</pallas_src>

<mosaic_0001>
module attributes {stable_mosaic.version = 11 : i64} {
  func.func @_circular_pad_kernel(%arg0: i32, %arg1: memref<4x16x16xf32, #tpu.memory_space<vmem>>, %arg2: memref<4x18x18xf32, #tpu.memory_space<vmem>>) attributes {dimension_semantics = [#tpu.dimension_semantics<parallel>], iteration_bounds = array<i64: 2>, scalar_prefetch = 0 : i64, scratch_operands = 0 : i64, tpu.core_type = #tpu.core_type<tc>, window_params = [{transform_indices = @transform_0, window_bounds = array<i64: 4, 16, 16>}, {transform_indices = @transform_1, window_bounds = array<i64: 4, 18, 18>}]} {
    %c0 = arith.constant 0 : index
    %c0_0 = arith.constant 0 : index
    %c0_1 = arith.constant 0 : index
    %0 = vector.load %arg1[%c0, %c0_0, %c0_1] : memref<4x16x16xf32, #tpu.memory_space<vmem>>, vector<4x16x16xf32>
    %1 = vector.extract_strided_slice %0 {offsets = [0, 15, 0], sizes = [4, 1, 16], strides = [1, 1, 1]} : vector<4x16x16xf32> to vector<4x1x16xf32>
    %2 = vector.extract_strided_slice %0 {offsets = [0, 0, 0], sizes = [4, 1, 16], strides = [1, 1, 1]} : vector<4x16x16xf32> to vector<4x1x16xf32>
    %3 = vector.extract_strided_slice %0 {offsets = [0, 0, 15], sizes = [4, 16, 1], strides = [1, 1, 1]} : vector<4x16x16xf32> to vector<4x16x1xf32>
    %4 = vector.extract_strided_slice %0 {offsets = [0, 0, 0], sizes = [4, 16, 1], strides = [1, 1, 1]} : vector<4x16x16xf32> to vector<4x16x1xf32>
    %c0_2 = arith.constant 0 : index
    %c1 = arith.constant 1 : index
    %c1_3 = arith.constant 1 : index
    %5 = vector.load %arg2[%c0_2, %c1, %c1_3] : memref<4x18x18xf32, #tpu.memory_space<vmem>>, vector<4x16x16xf32>
    tpu.vector_store %arg2[%c0_2, %c1, %c1_3], %0 {strides = array<i32>} : memref<4x18x18xf32, #tpu.memory_space<vmem>>, vector<4x16x16xf32>,
    %c0_4 = arith.constant 0 : index
    %c0_5 = arith.constant 0 : index
    %c1_6 = arith.constant 1 : index
    %6 = vector.load %arg2[%c0_4, %c0_5, %c1_6] : memref<4x18x18xf32, #tpu.memory_space<vmem>>, vector<4x1x16xf32>
    tpu.vector_store %arg2[%c0_4, %c0_5, %c1_6], %1 {strides = array<i32>} : memref<4x18x18xf32, #tpu.memory_space<vmem>>, vector<4x1x16xf32>,
    %c0_7 = arith.constant 0 : index
    %c17 = arith.constant 17 : index
    %c1_8 = arith.constant 1 : index
    %7 = vector.load %arg2[%c0_7, %c17, %c1_8] : memref<4x18x18xf32, #tpu.memory_space<vmem>>, vector<4x1x16xf32>
    tpu.vector_store %arg2[%c0_7, %c17, %c1_8], %2 {strides = array<i32>} : memref<4x18x18xf32, #tpu.memory_space<vmem>>, vector<4x1x16xf32>,
    %c0_9 = arith.constant 0 : index
    %c1_10 = arith.constant 1 : index
    %c0_11 = arith.constant 0 : index
    %8 = vector.load %arg2[%c0_9, %c1_10, %c0_11] : memref<4x18x18xf32, #tpu.memory_space<vmem>>, vector<4x16x1xf32>
    tpu.vector_store %arg2[%c0_9, %c1_10, %c0_11], %3 {strides = array<i32>} : memref<4x18x18xf32, #tpu.memory_space<vmem>>, vector<4x16x1xf32>,
    %9 = vector.extract_strided_slice %3 {offsets = [0, 15, 0], sizes = [4, 1, 1], strides = [1, 1, 1]} : vector<4x16x1xf32> to vector<4x1x1xf32>
    %c0_12 = arith.constant 0 : index
    %c0_13 = arith.constant 0 : index
    %c0_14 = arith.constant 0 : index
    %10 = vector.load %arg2[%c0_12, %c0_13, %c0_14] : memref<4x18x18xf32, #tpu.memory_space<vmem>>, vector<4x1x1xf32>
    tpu.vector_store %arg2[%c0_12, %c0_13, %c0_14], %9 {strides = array<i32>} : memref<4x18x18xf32, #tpu.memory_space<vmem>>, vector<4x1x1xf32>,
    %11 = vector.extract_strided_slice %3 {offsets = [0, 0, 0], sizes = [4, 1, 1], strides = [1, 1, 1]} : vector<4x16x1xf32> to vector<4x1x1xf32>
    %c0_15 = arith.constant 0 : index
    %c17_16 = arith.constant 17 : index
    %c0_17 = arith.constant 0 : index
    %12 = vector.load %arg2[%c0_15, %c17_16, %c0_17] : memref<4x18x18xf32, #tpu.memory_space<vmem>>, vector<4x1x1xf32>
    tpu.vector_store %arg2[%c0_15, %c17_16, %c0_17], %11 {strides = array<i32>} : memref<4x18x18xf32, #tpu.memory_space<vmem>>, vector<4x1x1xf32>,
    %c0_18 = arith.constant 0 : index
    %c1_19 = arith.constant 1 : index
    %c17_20 = arith.constant 17 : index
    %13 = vector.load %arg2[%c0_18, %c1_19, %c17_20] : memref<4x18x18xf32, #tpu.memory_space<vmem>>, vector<4x16x1xf32>
    tpu.vector_store %arg2[%c0_18, %c1_19, %c17_20], %4 {strides = array<i32>} : memref<4x18x18xf32, #tpu.memory_space<vmem>>, vector<4x16x1xf32>,
    %14 = vector.extract_strided_slice %4 {offsets = [0, 15, 0], sizes = [4, 1, 1], strides = [1, 1, 1]} : vector<4x16x1xf32> to vector<4x1x1xf32>
    %c0_21 = arith.constant 0 : index
    %c0_22 = arith.constant 0 : index
    %c17_23 = arith.constant 17 : index
    %15 = vector.load %arg2[%c0_21, %c0_22, %c17_23] : memref<4x18x18xf32, #tpu.memory_space<vmem>>, vector<4x1x1xf32>
    tpu.vector_store %arg2[%c0_21, %c0_22, %c17_23], %14 {strides = array<i32>} : memref<4x18x18xf32, #tpu.memory_space<vmem>>, vector<4x1x1xf32>,
    %16 = vector.extract_strided_slice %4 {offsets = [0, 0, 0], sizes = [4, 1, 1], strides = [1, 1, 1]} : vector<4x16x1xf32> to vector<4x1x1xf32>
    %c0_24 = arith.constant 0 : index
    %c17_25 = arith.constant 17 : index
    %c17_26 = arith.constant 17 : index
    %17 = vector.load %arg2[%c0_24, %c17_25, %c17_26] : memref<4x18x18xf32, #tpu.memory_space<vmem>>, vector<4x1x1xf32>
    tpu.vector_store %arg2[%c0_24, %c17_25, %c17_26], %16 {strides = array<i32>} : memref<4x18x18xf32, #tpu.memory_space<vmem>>, vector<4x1x1xf32>,
    return
  }
  func.func @transform_0(%arg0: i32) -> (i32, i32, i32) {
    %c0_i32 = arith.constant 0 : i32
    %c0_i32_0 = arith.constant 0 : i32
    %c0_i32_1 = arith.constant 0 : i32
    return %arg0, %c0_i32, %c0_i32_0 : i32, i32, i32
  }
  func.func @transform_1(%arg0: i32) -> (i32, i32, i32) {
    %c0_i32 = arith.constant 0 : i32
    %c0_i32_0 = arith.constant 0 : i32
    %c0_i32_1 = arith.constant 0 : i32
    return %arg0, %c0_i32, %c0_i32_0 : i32, i32, i32
  }
}

</mosaic_0001>

<bundles_post_ra>
// kernel: tpu_custom_call.1
= control target key start
LH: loop header
LB: loop body
LE: loop exit
PB: predicated region body
PF: predicated region fallthrough
CT: control target
= control target key end

     0   :  { %6 = vsyncpa [#allocation3], 0  ;;  %s689_s0 = inlined_call_operand.hbm [shape: f32[8,16,16], index: 0, kind: input, shape index: {}]   ;;  %s690_s1 = inlined_call_operand.vmem [shape: f32[8,18,18], index: 1, kind: output, shape index: {}]  }
   0x1   :  { %8 = vsyncpa [#allocation3 + $0x1], 0  ;;  %s500_s6 = smov 0   ;;  %s502_s7 = smov 0  }
   0x2   :  { %s504_s8 = smov 0   ;;  %s506_s9 = smov 0  }
   0x3 LB: > { %s358_s10 = sadd.s32 4294967295, %s483_s9   ;;  %s520_s11 = sadd.s32 1, %s483_s9   ;;  %s483_s9 = sphi %s506_s9, %s697_s9   ;;  %s479_s8 = sphi %s504_s8, %s696_s8   ;;  %s475_s7 = sphi %s502_s7, %s695_s7   ;;  %s471_s6 = sphi %s500_s6, %s694_s6  }
   0x4   : > { %s18_s12 = ssub.s32 %s483_s9, %s520_s11  ;;  %s21_s13 = sadd.s32 1, %s479_s8 }
   0x5   : > { %p19_p0 = scmp.eq.s32.totalorder %s18_s12, 0  ;;  %p28_p1 = scmp.ne.s32.totalorder %s479_s8, %s475_s7 }
   0x6   : > { %p29_p2 = scmp.eq.s32.totalorder %s483_s9, 0  ;;  %p34_p3 = scmp.ne.s32.totalorder %s475_s7, %s471_s6 }
   0x7   : > { %s530_s14 = scalar_select %p19_p0, %s479_s8, %s21_s13  }
   0x8   : > { %p532_p4 = por %p29_p2, %p28_p1  ;;  %p35_p5 = scmp.eq.s32.totalorder %s358_s10, 0 }
   0x9   : > { %p381_p6 = scmp.lt.s32.totalorder %s483_s9, 2  ;;  %s84_s17 = sand.u32 1, %s479_s8  }
   0xa   : > { %p539_p7 = por %p35_p5, %p34_p3  ;;  %s362_s18 = sshll.u32 %s84_s17, 6 }
   0xb   : > { %s373_s19 = sshll.u32 %s483_s9, 6  ;;  %s88_s23 = scalar_lea.vmem [#allocation2], %s362_s18 }
   0xc   : > { %s94_s22 = scalar_lea.hbm %s689_s0, %s373_s19  ;;  %s97_s24 = sshll.u32 %s88_s23, 4  ;;  %s98_s24 = int_to_ptr.vmem [resolvable:$true] %s97_s24 }
   0xd   : > { %s95_s25 = sshll.u32 %s94_s22, 4  ;;  %p550_p8 = pnand %p381_p6, %p532_p4  ;;  %s96_s25 = int_to_ptr.hbm [resolvable:$true] %s95_s25 }
   0xe   : > { %p366_p9 = scmp.ge.s32.totalorder %s483_s9, 1  ;;  %s85_s27 = scalar_lea.sflag [#allocation3], %s84_s17 }
   0xf   : > { %s419_s28 = sshra.s32 %s96_s25, 4  ;;  %p423_p11 = pneg %p550_p8  ;;  %s420_s28 = int_to_ptr.hbm [resolvable:$true] %s419_s28 }
  0x10   : > { %s421_s29 = scalar_lea.hbm %s420_s28, 64  ;;  %s426_s3 = scalar_lea.hbm %s689_s0, 128 }
  0x11   : > { %p422_p10 = scmp.ne.s32.totalorder %s420_s28, %s421_s29  ;;  %p427_p0 = scmp.lt.s32.totalorder %s420_s28, %s689_s0 }
  0x12   : > { %p428_p1 = scmp.lt.s32.totalorder %s426_s3, %s421_s29 }
  0x13   : > { %p424_p12 = pnand %p423_p11, %p422_p10 }
  0x14   : > { %p429_p2 = por %p428_p1, %p427_p0 }
  0x15   : > { %p425_p13 = pneg %p424_p12 }
  0x17   : > { %p430_p3 = pnand %p429_p2, %p425_p13 }
  0x19   : > { %433 = shalt.err (!%p430_p3)
}
  0x1a   : > { %s485_s6 = smov 128   ;;  %s486_s12 = smov 8  }
  0x1b   : > { %380 = dma.hbm_to_vmem [thread:$0]  (!%p550_p8), %s96_s25, 1024, %s98_s24, %s85_s27, %s485_s6, %s485_s6, %s486_s12  }
  0x1c   : > { %p105_p4 = scmp.lt.s32.totalorder %s483_s9, 3 }
  0x1e   : > { %p106_p5 = pnand %p366_p9, %p105_p4 }
  0x1f   : > { %s111_s13 = sand.u32 (!%p106_p5), 1, %s475_s7  }
  0x20   : > { %109 = sbr.rel (%p106_p5) target bundleno = 214 (0xd6), region = 24  ;;  %s367_s15 = sshll.u32 (!%p106_p5), %s111_s13, 6 }
  0x21   : > { %s112_s17 = scalar_lea.sflag (!%p106_p5), [#allocation3], %s111_s13  ;;  %s115_s18 = scalar_lea.vmem (!%p106_p5), [#allocation2], %s367_s15 }
  0x25   : > { %466 = dma.done.wait (%p539_p7), %s112_s17, 1024  }
  0x26   : > { %468 = vsyncadd (%p539_p7), %s112_s17, 4294966272  ;;  %v144_v0 = vld [vmem:[%s115_s18] sm:$0xff]  ;;  %v146_v1 = vld [vmem:[%s115_s18 + $0x10] sm:$0xff]  ;;  %s487_s19 = smov 1   ;;  %s488_s20 = smov 113   ;;  %vm184_vm0 = vcmask 138248  }
  0x27   : > { %160 = vrot.lane.b32.xlu0 %v144_v0, %s487_s19  ;;  %164 = vrot.lane.b32.xlu1 %v146_v1, %s487_s19  ;;  %v148_v2 = vld [vmem:[%s115_s18 + $0x20] sm:$0xff]  ;;  %v145_v3 = vld [vmem:[%s115_s18 + $0x8] sm:$0xff]  ;;  %s489_s16 = smov 17   ;;  %s368_s21 = sshll.u32 %s358_s10, 2  ;;  %vm198_vm1 = vcmask 131080   ;;  %vm193_vm2 = vcmask 138255  }
  0x28   : > { %168 = vrot.lane.b32.xlu2 %v148_v2, %s487_s19  ;;  %v147_v4 = vld [vmem:[%s115_s18 + $0x18] sm:$0xff]  ;;  %v149_v5 = vld [vmem:[%s115_s18 + $0x28] sm:$0xff]  ;;  %v150_v6 = vld [vmem:[%s115_s18 + $0x30] sm:$0xff]  ;;  %p138_p6 = scmp.lt.s32.totalorder %s368_s21, 7  ;;  %vm227_vm3 = vcmask 7168   ;;  %vm241_vm4 = vcmask 0  }
  0x29   : > { %v151_v7 = vld [vmem:[%s115_s18 + $0x38] sm:$0xff]  ;;  %vm236_vm5 = vcmask 7175   ;;  %vm270_vm6 = vcmask 146568   ;;  %vm284_vm7 = vcmask 139400   ;;  %vm279_vm8 = vcmask 146575  }
  0x2a   : > { %s699_s21 = smov (!%p138_p6, %s368_s21), 7 }
  0x2b   : > { %s374_s22 = smul.u32 24, %s699_s21 }
  0x2d   : > { %s578_s25 = scalar_lea.vmem %s690_s1, %s374_s22 }
  0x2f   : > { %162 = vrot.lane.b32.xlu0 %v145_v3, %s487_s19  ;;  %166 = vrot.lane.b32.xlu1 %v147_v4, %s487_s19 }
  0x30   : > { %170 = vrot.lane.b32.xlu2 %v149_v5, %s487_s19 }
  0x37   : > { %172 = vrot.lane.b32.xlu0 %v150_v6, %s487_s19  ;;  %174 = vrot.lane.b32.xlu1 %v151_v7, %s487_s19 }
  0x38   : > { %203 = vrot.lane.b32.xlu2 %v144_v0, %s488_s20 }
  0x3f   : > { %205 = vrot.lane.b32.xlu0 %v145_v3, %s488_s20  ;;  %207 = vrot.lane.b32.xlu1 %v146_v1, %s488_s20 }
  0x40   : > { %209 = vrot.lane.b32.xlu2 %v147_v4, %s488_s20 }
  0x47   : > { %211 = vrot.lane.b32.xlu0 %v148_v2, %s488_s20  ;;  %213 = vrot.lane.b32.xlu1 %v149_v5, %s488_s20 }
  0x48   : > { %215 = vrot.lane.b32.xlu2 %v150_v6, %s488_s20 }
  0x4f   : > { %217 = vrot.lane.b32.xlu0 %v151_v7, %s488_s20  ;;  %246 = vrot.lane.b32.xlu1 %v144_v0, %s489_s16 }
  0x50   : > { %248 = vrot.lane.b32.xlu2 %v145_v3, %s489_s16 }
  0x57   : > { %250 = vrot.lane.b32.xlu0 %v146_v1, %s489_s16  ;;  %252 = vrot.lane.b32.xlu1 %v147_v4, %s489_s16 }
  0x58   : > { %254 = vrot.lane.b32.xlu2 %v148_v2, %s489_s16 }
  0x5f   : > { %256 = vrot.lane.b32.xlu0 %v149_v5, %s489_s16  ;;  %258 = vrot.lane.b32.xlu1 %v150_v6, %s489_s16 }
  0x60   : > { %260 = vrot.lane.b32.xlu2 %v151_v7, %s489_s16 }
  0x82   : > { %v169_v8 = vpop.permute.xlu2 %168 }
  0x83   : > { %189 = vst.msk [vmem:[%s578_s25 + $0x31] sm:$0xff] %vm184_vm0, %v169_v8 }
  0x84   : > { %201 = vst.msk [vmem:[%s578_s25 + $0x41] sm:$0x1] %vm198_vm1, %v169_v8 }
  0x8a   : > { %v171_v9 = vpop.permute.xlu2 %170 }
  0x8b   : > { %190 = vst.msk [vmem:[%s578_s25 + $0x39] sm:$0xff] %vm184_vm0, %v171_v9 }
  0x8c   : > { %196 = vst.msk [vmem:[%s578_s25 + $0x29] sm:$0x80] %vm193_vm2, %v171_v9 }
  0x92   : > { %v204_v12 = vpop.permute.xlu2 %203 }
  0x99   : > { %v161_v10 = vpop.permute.xlu0 %160  ;;  %v165_v11 = vpop.permute.xlu1 %164 }
  0x9a   : > { %185 = vst.msk [vmem:[%s578_s25 + $0x1] sm:$0xff] %vm184_vm0, %v161_v10  ;;  %v210_v17 = vpop.permute.xlu2 %209 }
  0x9b   : > { %199 = vst.msk [vmem:[%s578_s25 + $0x11] sm:$0x1] %vm198_vm1, %v161_v10 }
  0x9c   : > { %187 = vst.msk [vmem:[%s578_s25 + $0x19] sm:$0xff] %vm184_vm0, %v165_v11 }
  0x9d   : > { %200 = vst.msk [vmem:[%s578_s25 + $0x29] sm:$0x1] %vm198_vm1, %v165_v11 }
  0x9e   : > { %228 = vst.msk [vmem:[%s578_s25 + $0x1] sm:$0xff] %vm227_vm3, %v204_v12 }
  0x9f   : > { %242 = vst.msk [vmem:[%s578_s25 + $0x11] sm:$0x1] %vm241_vm4, %v204_v12 }
  0xa1   : > { %v163_v13 = vpop.permute.xlu0 %162  ;;  %v167_v14 = vpop.permute.xlu1 %166 }
  0xa2   : > { %186 = vst.msk [vmem:[%s578_s25 + $0x9] sm:$0xff] %vm184_vm0, %v163_v13  ;;  %v216_v20 = vpop.permute.xlu2 %215 }
  0xa3   : > { %194 = vst.msk [vmem:[%s578_s25 - $0x7] sm:$0x80] %vm193_vm2, %v163_v13 }
  0xa4   : > { %188 = vst.msk [vmem:[%s578_s25 + $0x21] sm:$0xff] %vm184_vm0, %v167_v14 }
  0xa5   : > { %195 = vst.msk [vmem:[%s578_s25 + $0x11] sm:$0x80] %vm193_vm2, %v167_v14 }
  0xa6   : > { %231 = vst.msk [vmem:[%s578_s25 + $0x21] sm:$0xff] %vm227_vm3, %v210_v17 }
  0xa7   : > { %238 = vst.msk [vmem:[%s578_s25 + $0x11] sm:$0x80] %vm236_vm5, %v210_v17 }
  0xa9   : > { %v173_v15 = vpop.permute.xlu0 %172  ;;  %v175_v16 = vpop.permute.xlu1 %174 }
  0xaa   : > { %191 = vst.msk [vmem:[%s578_s25 + $0x49] sm:$0xff] %vm184_vm0, %v173_v15  ;;  %v249_v23 = vpop.permute.xlu2 %248 }
  0xab   : > { %202 = vst.msk [vmem:[%s578_s25 + $0x59] sm:$0x1] %vm198_vm1, %v173_v15 }
  0xac   : > { %192 = vst.msk [vmem:[%s578_s25 + $0x51] sm:$0xff] %vm184_vm0, %v175_v16 }
  0xad   : > { %197 = vst.msk [vmem:[%s578_s25 + $0x41] sm:$0x80] %vm193_vm2, %v175_v16 }
  0xae   : > { %234 = vst.msk [vmem:[%s578_s25 + $0x49] sm:$0xff] %vm227_vm3, %v216_v20 }
  0xaf   : > { %245 = vst.msk [vmem:[%s578_s25 + $0x59] sm:$0x1] %vm241_vm4, %v216_v20 }
  0xb1   : > { %v206_v18 = vpop.permute.xlu0 %205  ;;  %v208_v19 = vpop.permute.xlu1 %207 }
  0xb2   : > { %229 = vst.msk [vmem:[%s578_s25 + $0x9] sm:$0xff] %vm227_vm3, %v206_v18  ;;  %v255_v26 = vpop.permute.xlu2 %254 }
  0xb3   : > { %237 = vst.msk [vmem:[%s578_s25 - $0x7] sm:$0x80] %vm236_vm5, %v206_v18 }
  0xb4   : > { %230 = vst.msk [vmem:[%s578_s25 + $0x19] sm:$0xff] %vm227_vm3, %v208_v19 }
  0xb5   : > { %243 = vst.msk [vmem:[%s578_s25 + $0x29] sm:$0x1] %vm241_vm4, %v208_v19 }
  0xb6   : > { %272 = vst.msk [vmem:[%s578_s25 + $0x9] sm:$0xff] %vm270_vm6, %v249_v23 }
  0xb7   : > { %280 = vst.msk [vmem:[%s578_s25 - $0x7] sm:$0x80] %vm279_vm8, %v249_v23 }
  0xb9   : > { %v212_v21 = vpop.permute.xlu0 %211  ;;  %v214_v22 = vpop.permute.xlu1 %213 }
  0xba   : > { %232 = vst.msk [vmem:[%s578_s25 + $0x31] sm:$0xff] %vm227_vm3, %v212_v21  ;;  %v261_v31 = vpop.permute.xlu2 %260 }
  0xbb   : > { %244 = vst.msk [vmem:[%s578_s25 + $0x41] sm:$0x1] %vm241_vm4, %v212_v21 }
  0xbc   : > { %233 = vst.msk [vmem:[%s578_s25 + $0x39] sm:$0xff] %vm227_vm3, %v214_v22 }
  0xbd   : > { %239 = vst.msk [vmem:[%s578_s25 + $0x29] sm:$0x80] %vm236_vm5, %v214_v22 }
  0xbe   : > { %275 = vst.msk [vmem:[%s578_s25 + $0x31] sm:$0xff] %vm270_vm6, %v255_v26 }
  0xbf   : > { %287 = vst.msk [vmem:[%s578_s25 + $0x41] sm:$0x1] %vm284_vm7, %v255_v26 }
  0xc1   : > { %v218_v24 = vpop.permute.xlu0 %217  ;;  %v247_v25 = vpop.permute.xlu1 %246 }
  0xc2   : > { %235 = vst.msk [vmem:[%s578_s25 + $0x51] sm:$0xff] %vm227_vm3, %v218_v24 }
  0xc3   : > { %240 = vst.msk [vmem:[%s578_s25 + $0x41] sm:$0x80] %vm236_vm5, %v218_v24 }
  0xc4   : > { %271 = vst.msk [vmem:[%s578_s25 + $0x1] sm:$0xff] %vm270_vm6, %v247_v25 }
  0xc5   : > { %285 = vst.msk [vmem:[%s578_s25 + $0x11] sm:$0x1] %vm284_vm7, %v247_v25 }
  0xc6   : > { %278 = vst.msk [vmem:[%s578_s25 + $0x51] sm:$0xff] %vm270_vm6, %v261_v31 }
  0xc7   : > { %283 = vst.msk [vmem:[%s578_s25 + $0x41] sm:$0x80] %vm279_vm8, %v261_v31 }
  0xc9   : > { %v251_v27 = vpop.permute.xlu0 %250  ;;  %v253_v28 = vpop.permute.xlu1 %252 }
  0xca   : > { %273 = vst.msk [vmem:[%s578_s25 + $0x19] sm:$0xff] %vm270_vm6, %v251_v27 }
  0xcb   : > { %286 = vst.msk [vmem:[%s578_s25 + $0x29] sm:$0x1] %vm284_vm7, %v251_v27 }
  0xcc   : > { %274 = vst.msk [vmem:[%s578_s25 + $0x21] sm:$0xff] %vm270_vm6, %v253_v28 }
  0xcd   : > { %281 = vst.msk [vmem:[%s578_s25 + $0x11] sm:$0x80] %vm279_vm8, %v253_v28 }
  0xd1   : > { %v257_v29 = vpop.permute.xlu0 %256  ;;  %v259_v30 = vpop.permute.xlu1 %258 }
  0xd2   : > { %276 = vst.msk [vmem:[%s578_s25 + $0x39] sm:$0xff] %vm270_vm6, %v257_v29 }
  0xd3   : > { %282 = vst.msk [vmem:[%s578_s25 + $0x29] sm:$0x80] %vm279_vm8, %v257_v29 }
  0xd4   : > { %277 = vst.msk [vmem:[%s578_s25 + $0x49] sm:$0xff] %vm270_vm6, %v259_v30 }
  0xd5   : > { %288 = vst.msk [vmem:[%s578_s25 + $0x59] sm:$0x1] %vm284_vm7, %v259_v30 }
  0xd6 PF: > { %p11_p7 = scmp.ge.s32.totalorder %s520_s11, 4   ;;  %s694_s6 = smov %s475_s7 }
  0xd7   : > { %s695_s7 = smov %s479_s8  ;;  %s696_s8 = smov %s530_s14 }
  0xd8   : > { %s697_s9 = smov %s520_s11  ;;  %13 = sbr.rel (!%p11_p7) target bundleno = 3 (0x3), region = 64 }
  0xdd   :  { %313 = vsyncpa [#allocation3], 1 }
  0xde   :  { %315 = vsyncpa [#allocation3 + $0x1], 1 }

</bundles_post_ra>
